<compile_context>
chip_gen: v7x
topology: tpu7x:2x2x1
jax: 0.10.0
libtpu: 0.0.40
codegen_flags: <defaults>
</compile_context>

<pallas_src>
import functools

import jax
import jax.numpy as jnp
from jax.experimental import pallas as pl
from jax.experimental.pallas import tpu as pltpu


def mlp_kernel(x_ref, w1t_ref, b1_ref, w2t_ref, b2_ref, w3_ref, b3_ref, o_ref):
    # Layer 1: (TB, D) @ (D, 2D) -> (TB, 2D), bias row broadcast, ReLU.
    h1 = jnp.dot(x_ref[...], w1t_ref[...], preferred_element_type=jnp.float32)
    h1 = jnp.maximum(h1 + b1_ref[...], 0.0)
    # Layer 2: (TB, 2D) @ (2D, D) -> (TB, D), bias row broadcast, ReLU.
    h2 = jnp.dot(h1, w2t_ref[...], preferred_element_type=jnp.float32)
    h2 = jnp.maximum(h2 + b2_ref[...], 0.0)
    # Layer 3: VPU multiply + cross-lane reduce (avoids an N=1 MXU pass),
    # scalar bias read from SMEM.
    out = jnp.sum(h2 * w3_ref[...], axis=1, keepdims=True) + b3_ref[0, 0]
    o_ref[...] = out.astype(o_ref.dtype)


def mlp_forward(x, w1, b1, w2, b2, w3, b3, *, tb=512):
    """x: (B, D); weights in PyTorch layout: w1 (2D, D), w2 (D, 2D), w3 (1, D)."""
    B, D = x.shape
    D2 = w1.shape[0]
    assert w1.shape == (D2, D) and b1.shape == (D2,)
    assert w2.shape == (D, D2) and b2.shape == (D,)
    assert w3.shape == (1, D) and b3.shape == (1,)

    # Pre-transpose the tiny weights once (constant-folded under jit) so every
    # layer is a plain A @ B on the MXU.  No transpose / pad pass over x.
    w1t = w1.T.astype(jnp.float32)            # (D, 2D)
    w2t = w2.T.astype(jnp.float32)            # (2D, D)
    b1r = b1.reshape(1, D2).astype(jnp.float32)
    b2r = b2.reshape(1, D).astype(jnp.float32)
    w3r = w3.reshape(1, D).astype(jnp.float32)
    b3s = b3.reshape(1, 1).astype(jnp.float32)  # scalar via SMEM

    # Single full block when the batch fits in one tile, otherwise TB-sized
    # tiles with Pallas masking the ragged last block.
    tb_eff = B if B <= tb else tb
    assert tb_eff == B or tb_eff % 8 == 0
    num_tiles = pl.cdiv(B, tb_eff)

    flops = 2 * B * (D * D2 + D2 * D + D)
    bytes_accessed = 4 * (x.size + w1.size + b1.size + w2.size + b2.size
                          + w3.size + b3.size + B)

    grid_spec = pltpu.PrefetchScalarGridSpec(
        num_scalar_prefetch=0,
        grid=(num_tiles,),
        in_specs=[
            pl.BlockSpec((tb_eff, D), lambda i: (i, 0)),        # x tile (pipelined)
            pl.BlockSpec((D, D2), lambda i: (0, 0)),            # W1^T (VMEM-resident)
            pl.BlockSpec((1, D2), lambda i: (0, 0)),            # b1 row
            pl.BlockSpec((D2, D), lambda i: (0, 0)),            # W2^T (VMEM-resident)
            pl.BlockSpec((1, D), lambda i: (0, 0)),             # b2 row
            pl.BlockSpec((1, D), lambda i: (0, 0)),             # w3 row
            pl.BlockSpec(memory_space=pltpu.MemorySpace.SMEM),  # b3 scalar
        ],
        out_specs=pl.BlockSpec((tb_eff, 1), lambda i: (i, 0)),
    )

    return pl.pallas_call(
        mlp_kernel,
        out_shape=jax.ShapeDtypeStruct((B, 1), x.dtype),
        grid_spec=grid_spec,
        compiler_params=pltpu.CompilerParams(dimension_semantics=("parallel",)),
        cost_estimate=pl.CostEstimate(flops=flops, transcendentals=0,
                                      bytes_accessed=bytes_accessed),
    )(x, w1t, b1r, w2t, b2r, w3r, b3s)


def init_params(key, d):
    # PyTorch-layout Linear params with PyTorch's default uniform init.
    ks = jax.random.split(key, 6)

    def lin(kw, kb, fan_in, fan_out):
        bound = 1.0 / jnp.sqrt(fan_in)
        w = jax.random.uniform(kw, (fan_out, fan_in), jnp.float32, -bound, bound)
        b = jax.random.uniform(kb, (fan_out,), jnp.float32, -bound, bound)
        return w, b

    w1, b1 = lin(ks[0], ks[1], d, 2 * d)
    w2, b2 = lin(ks[2], ks[3], 2 * d, d)
    w3, b3 = lin(ks[4], ks[5], d, 1)
    return w1, b1, w2, b2, w3, b3


def mlp_reference(x, w1, b1, w2, b2, w3, b3):
    h1 = jnp.maximum(x @ w1.T + b1, 0.0)
    h2 = jnp.maximum(h1 @ w2.T + b2, 0.0)
    return h2 @ w3.T + b3


if __name__ == "__main__":
    key = jax.random.PRNGKey(0)
    kx, kp = jax.random.split(key)

    B, D = 200, 32  # batch not a tile multiple (exercises the ragged last block)
    x = jax.random.normal(kx, (B, D), jnp.float32)
    params = init_params(kp, D)

    ref = mlp_reference(x, *params)

    # Small tile: grid of 2 with a masked partial last block.
    fwd_small = jax.jit(functools.partial(mlp_forward, tb=128))
    out_small = jax.block_until_ready(fwd_small(x, *params))
    # Default tile: whole batch in one full block.
    out_default = jax.block_until_ready(jax.jit(mlp_forward)(x, *params))

    for out in (out_small, out_default):
        assert out.shape == (B, 1)
        assert jnp.allclose(out, ref, atol=1e-4, rtol=1e-4), "mismatch vs reference"

    print("KERNEL_OK")
</pallas_src>

<mosaic_0001>
module attributes {stable_mosaic.version = 11 : i64} {
  func.func @mlp_kernel(%arg0: i32, %arg1: memref<128x32xf32, #tpu.memory_space<vmem>>, %arg2: memref<32x64xf32, #tpu.memory_space<vmem>>, %arg3: memref<1x64xf32, #tpu.memory_space<vmem>>, %arg4: memref<64x32xf32, #tpu.memory_space<vmem>>, %arg5: memref<1x32xf32, #tpu.memory_space<vmem>>, %arg6: memref<1x32xf32, #tpu.memory_space<vmem>>, %arg7: memref<1x1xf32, #tpu.memory_space<smem>>, %arg8: memref<128x1xf32, #tpu.memory_space<vmem>>) attributes {dimension_semantics = [#tpu.dimension_semantics<parallel>], iteration_bounds = array<i64: 2>, scalar_prefetch = 0 : i64, scratch_operands = 0 : i64, tpu.core_type = #tpu.core_type<tc>, window_params = [{transform_indices = @transform_0, window_bounds = array<i64: 128, 32>}, {pipeline_mode = #tpu.pipeline_mode<synchronous>, transform_indices = @transform_1, window_bounds = array<i64: 32, 64>}, {pipeline_mode = #tpu.pipeline_mode<synchronous>, transform_indices = @transform_2, window_bounds = array<i64: 1, 64>}, {pipeline_mode = #tpu.pipeline_mode<synchronous>, transform_indices = @transform_3, window_bounds = array<i64: 64, 32>}, {pipeline_mode = #tpu.pipeline_mode<synchronous>, transform_indices = @transform_4, window_bounds = array<i64: 1, 32>}, {pipeline_mode = #tpu.pipeline_mode<synchronous>, transform_indices = @transform_5, window_bounds = array<i64: 1, 32>}, {transform_indices = @transform_6, window_bounds = array<i64: 1, 1>}, {transform_indices = @transform_7, window_bounds = array<i64: 128, 1>}]} {
    %c0 = arith.constant 0 : index
    %c0_0 = arith.constant 0 : index
    %0 = vector.load %arg1[%c0, %c0_0] : memref<128x32xf32, #tpu.memory_space<vmem>>, vector<128x32xf32>
    %c0_1 = arith.constant 0 : index
    %c0_2 = arith.constant 0 : index
    %1 = vector.load %arg2[%c0_1, %c0_2] : memref<32x64xf32, #tpu.memory_space<vmem>>, vector<32x64xf32>
    %cst = arith.constant dense<0.000000e+00> : vector<128x64xf32>
    %2 = tpu.matmul %0, %1, %cst {dimension_numbers = #tpu.dot_dimension_numbers<[1], [0], [0], [1], [0, 0, 1, 1], [], []>} : vector<128x32xf32>, vector<32x64xf32>, vector<128x64xf32> -> vector<128x64xf32>
    %c0_3 = arith.constant 0 : index
    %c0_4 = arith.constant 0 : index
    %3 = vector.load %arg3[%c0_3, %c0_4] : memref<1x64xf32, #tpu.memory_space<vmem>>, vector<1x64xf32>
    %4 = vector.broadcast %3 : vector<1x64xf32> to vector<128x64xf32>
    %5 = arith.addf %2, %4 : vector<128x64xf32>
    %cst_5 = arith.constant 0.000000e+00 : f32
    %6 = vector.broadcast %cst_5 : f32 to vector<128x64xf32>
    %7 = arith.maximumf %5, %6 : vector<128x64xf32>
    %c0_6 = arith.constant 0 : index
    %c0_7 = arith.constant 0 : index
    %8 = vector.load %arg4[%c0_6, %c0_7] : memref<64x32xf32, #tpu.memory_space<vmem>>, vector<64x32xf32>
    %cst_8 = arith.constant dense<0.000000e+00> : vector<128x32xf32>
    %9 = tpu.matmul %7, %8, %cst_8 {dimension_numbers = #tpu.dot_dimension_numbers<[1], [0], [0], [1], [0, 0, 1, 1], [], []>} : vector<128x64xf32>, vector<64x32xf32>, vector<128x32xf32> -> vector<128x32xf32>
    %c0_9 = arith.constant 0 : index
    %c0_10 = arith.constant 0 : index
    %10 = vector.load %arg5[%c0_9, %c0_10] : memref<1x32xf32, #tpu.memory_space<vmem>>, vector<1x32xf32>
    %11 = vector.broadcast %10 : vector<1x32xf32> to vector<128x32xf32>
    %12 = arith.addf %9, %11 : vector<128x32xf32>
    %cst_11 = arith.constant 0.000000e+00 : f32
    %13 = vector.broadcast %cst_11 : f32 to vector<128x32xf32>
    %14 = arith.maximumf %12, %13 : vector<128x32xf32>
    %c0_12 = arith.constant 0 : index
    %c0_13 = arith.constant 0 : index
    %15 = vector.load %arg6[%c0_12, %c0_13] : memref<1x32xf32, #tpu.memory_space<vmem>>, vector<1x32xf32>
    %16 = vector.broadcast %15 : vector<1x32xf32> to vector<128x32xf32>
    %17 = arith.mulf %14, %16 : vector<128x32xf32>
    %cst_14 = arith.constant dense<0.000000e+00> : vector<128xf32>
    %18 = vector.multi_reduction <add>, %17, %cst_14 [1] : vector<128x32xf32> to vector<128xf32>
    %19 = vector.shape_cast %18 : vector<128xf32> to vector<128x1xf32>
    %c0_15 = arith.constant 0 : index
    %c0_16 = arith.constant 0 : index
    %20 = memref.load %arg7[%c0_15, %c0_16] : memref<1x1xf32, #tpu.memory_space<smem>>
    %21 = vector.broadcast %20 : f32 to vector<128x1xf32>
    %22 = arith.addf %19, %21 : vector<128x1xf32>
    %c0_17 = arith.constant 0 : index
    %c0_18 = arith.constant 0 : index
    %23 = vector.load %arg8[%c0_17, %c0_18] : memref<128x1xf32, #tpu.memory_space<vmem>>, vector<128x1xf32>
    tpu.vector_store %arg8[%c0_17, %c0_18], %22 {strides = array<i32>} : memref<128x1xf32, #tpu.memory_space<vmem>>, vector<128x1xf32>,
    return
  }
  func.func @transform_0(%arg0: i32) -> (i32, i32) {
    %c0_i32 = arith.constant 0 : i32
    %c0_i32_0 = arith.constant 0 : i32
    return %arg0, %c0_i32 : i32, i32
  }
  func.func @transform_1(%arg0: i32) -> (i32, i32) {
    %c0_i32 = arith.constant 0 : i32
    %c0_i32_0 = arith.constant 0 : i32
    %c0_i32_1 = arith.constant 0 : i32
    return %c0_i32, %c0_i32_0 : i32, i32
  }
  func.func @transform_2(%arg0: i32) -> (i32, i32) {
    %c0_i32 = arith.constant 0 : i32
    %c0_i32_0 = arith.constant 0 : i32
    %c0_i32_1 = arith.constant 0 : i32
    return %c0_i32, %c0_i32_0 : i32, i32
  }
  func.func @transform_3(%arg0: i32) -> (i32, i32) {
    %c0_i32 = arith.constant 0 : i32
    %c0_i32_0 = arith.constant 0 : i32
    %c0_i32_1 = arith.constant 0 : i32
    return %c0_i32, %c0_i32_0 : i32, i32
  }
  func.func @transform_4(%arg0: i32) -> (i32, i32) {
    %c0_i32 = arith.constant 0 : i32
    %c0_i32_0 = arith.constant 0 : i32
    %c0_i32_1 = arith.constant 0 : i32
    return %c0_i32, %c0_i32_0 : i32, i32
  }
  func.func @transform_5(%arg0: i32) -> (i32, i32) {
    %c0_i32 = arith.constant 0 : i32
    %c0_i32_0 = arith.constant 0 : i32
    %c0_i32_1 = arith.constant 0 : i32
    return %c0_i32, %c0_i32_0 : i32, i32
  }
  func.func @transform_6(%arg0: i32) -> (i32, i32) {
    %c0_i32 = arith.constant 0 : i32
    %c0_i32_0 = arith.constant 0 : i32
    %c0_i32_1 = arith.constant 0 : i32
    return %c0_i32, %c0_i32_0 : i32, i32
  }
  func.func @transform_7(%arg0: i32) -> (i32, i32) {
    %c0_i32 = arith.constant 0 : i32
    %c0_i32_0 = arith.constant 0 : i32
    return %arg0, %c0_i32 : i32, i32
  }
}

</mosaic_0001>

<bundles_post_ra>
// kernel: mlp_forward.1
= control target key start
LH: loop header
LB: loop body
LE: loop exit
PB: predicated region body
PF: predicated region fallthrough
CT: control target
= control target key end

     0   :  { %s1892_s0 = inlined_call_operand.vmem [shape: f32[200,32], index: 0, kind: input, shape index: {}]   ;;  %s1893_s1 = inlined_call_operand.vmem [shape: f32[32,64], index: 1, kind: input, shape index: {}]   ;;  %s1894_s2 = inlined_call_operand.vmem [shape: f32[1,64], index: 2, kind: input, shape index: {}]   ;;  %s1895_s3 = inlined_call_operand.vmem [shape: f32[64,32], index: 3, kind: input, shape index: {}]   ;;  %s1896_s4 = inlined_call_operand.vmem [shape: f32[1,32], index: 4, kind: input, shape index: {}]   ;;  %s1897_s5 = inlined_call_operand.vmem [shape: f32[1,32], index: 5, kind: input, shape index: {}]   ;;  %s1898_s6 = inlined_call_operand.<no memory space> [shape: f32[1,1], index: 6, kind: input, shape index: {}]   ;;  %s1899_s7 = inlined_call_operand.vmem [shape: f32[200,1], index: 7, kind: output, shape index: {}]  }
   0x1   :  { %12 = sst [smem:[#allocation2]] %s1898_s6 }
   0x2   :  { %s1573_s26 = smov 0   ;;  %s1575_s27 = smov 0  }
   0x3   :  { %s1577_s28 = smov 0  }
   0x4 LB: > { %s1586_s6 = sadd.s32 4294967295, %s1496_s28   ;;  %s1588_s29 = sadd.s32 1, %s1496_s28   ;;  %s1496_s28 = sphi %s1577_s28, %s1906_s28   ;;  %s1492_s27 = sphi %s1575_s27, %s1905_s27   ;;  %s1488_s26 = sphi %s1573_s26, %s1904_s26  }
   0x5   : > { %s174_s30 = ssub.s32 %s1496_s28, %s1588_s29  ;;  %s177_s8 = sadd.s32 1, %s1492_s27 }
   0x6   : > { %p175_p0 = scmp.eq.s32.totalorder %s174_s30, 0  ;;  %p187_p1 = scmp.ne.s32.totalorder %s1492_s27, %s1488_s26 }
   0x7   : > { %p188_p2 = scmp.eq.s32.totalorder %s1586_s6, 1  ;;  %p1147_p3 = scmp.ge.s32.totalorder %s1496_s28, 1 }
   0x8   : > { %s1596_s9 = scalar_select %p175_p0, %s1492_s27, %s177_s8  }
   0x9   : > { %p1598_p4 = por %p188_p2, %p187_p1  ;;  %p247_p5 = scmp.lt.s32.totalorder %s1496_s28, 3 }
   0xb   : > { %p248_p6 = pnand %p1147_p3, %p247_p5 }
   0xc   : > { %v317_v0 = vld [vmem:[%s1893_s1] sm:$0xff] (!%p248_p6)  ;;  %v318_v1 = vld [vmem:[%s1893_s1 + $0x8] sm:$0xff] (!%p248_p6)  ;;  %v319_v2 = vld [vmem:[%s1893_s1 + $0x10] sm:$0xff] (!%p248_p6)  ;;  %s1612_s17 = sshll.u32 (!%p248_p6), %s1586_s6, 4  ;;  %vm328_vm0 = vcmask (!%p248_p6), 261120   ;;  %vm553_vm1 = vcmask (!%p248_p6), 523264  }
   0xd   : > { %251 = sbr.rel (%p248_p6) target bundleno = 689 (0x2b1), region = 48  ;;  %v1322_v3 = vpack.c.bf16 (!%p248_p6), %v318_v1, %v317_v0  ;;  %v320_v4 = vld [vmem:[%s1893_s1 + $0x18] sm:$0xff] (!%p248_p6)  ;;  %p287_p7 = scmp.lt.s32.totalorder (!%p248_p6), %s1612_s17, 24  ;;  %v538_v5 = vld [vmem:[%s1895_s3] sm:$0xff] (!%p248_p6)  ;;  %v539_v6 = vld [vmem:[%s1895_s3 + $0x8] sm:$0xff] (!%p248_p6)  ;;  %vm852_vm2 = vcmask (!%p248_p6), 7168  }
   0xe   : > { %v1326_v7 = vpack.c.bf16 (!%p248_p6), %v320_v4, %v319_v2  ;;  %v1330_v8 = vpack.c.bf16 (!%p248_p6), %v539_v6, %v538_v5  ;;  %v540_v9 = vld [vmem:[%s1895_s3 + $0x10] sm:$0xff] (!%p248_p6)  ;;  %v541_v10 = vld [vmem:[%s1895_s3 + $0x18] sm:$0xff] (!%p248_p6)  ;;  %v542_v12 = vld [vmem:[%s1895_s3 + $0x20] sm:$0xff] (!%p248_p6)  ;;  %s834_s12 = sld [smem:[#allocation2]] (!%p248_p6)  ;;  %s279_s13 = sand.u32 (!%p248_p6), 1, %s1488_s26  }
   0xf   : > { %1323 = vmatprep.subr.bf16.mxu0 (!%p248_p6), %v1322_v3  ;;  %v1334_v11 = vpack.c.bf16 (!%p248_p6), %v541_v10, %v540_v9  ;;  %v543_v13 = vld [vmem:[%s1895_s3 + $0x28] sm:$0xff] (!%p248_p6)  ;;  %v544_v31 = vld [vmem:[%s1895_s3 + $0x30] sm:$0xff] (!%p248_p6)  ;;  %v545_v32 = vld [vmem:[%s1895_s3 + $0x38] sm:$0xff] (!%p248_p6)  ;;  %s1148_s14 = sshll.u32 (!%p248_p6), %s279_s13, 7 }
  0x10   : > { %1325 = vmatpush3.bf16.msra.mxu0 (!%p248_p6), %v1322_v3  ;;  %1346 = vmatprep.subr.bf16.mxu1 (!%p248_p6), %v1330_v8  ;;  %v1338_v16 = vpack.c.bf16 (!%p248_p6), %v543_v13, %v542_v12  ;;  %v1342_v33 = vpack.c.bf16 (!%p248_p6), %v545_v32, %v544_v31  ;;  %v1151_v34 = vld [vmem:[%s1894_s2] ss:$0 sm:$0xff] (!%p248_p6)  ;;  %s1758_s15 = scalar_lea.vmem (!%p248_p6), [#allocation3], %s1148_s14  }
  0x11   : > { %1327 = vmatprep.subr.bf16.mxu0 (!%p248_p6), %v1326_v7  ;;  %1350 = vmatpush3.bf16.msra.mxu1 (!%p248_p6), %v1330_v8 }
  0x12   : > { %1347 = vmatprep.subr.bf16.mxu1 (!%p248_p6), %v1334_v11 }
  0x14   : > { %s288_s8 = scalar_select %p287_p7, %s1612_s17, 24  ;;  %1329 = vmatpush3.bf16.msra.mxu0 %v1326_v7 }
  0x15   : > { %1331 = vmatprep.subr.bf16.mxu0 %v1330_v8  ;;  %1351 = vmatpush3.bf16.msra.mxu1 %v1334_v11  ;;  %s877_s26 = ssub.s32 (%p1598_p4), 25, %s1612_s17  ;;  %s1203_s16 = sshll.u32 (%p1598_p4), %s1586_s6, 7 }
  0x16   : > { %s1150_s11 = sshll.u32 %s288_s8, 3  ;;  %1348 = vmatprep.subr.bf16.mxu1 %v1338_v16  ;;  %p878_p8 = scmp.lt.s32.totalorder (%p1598_p4), %s877_s26, 16 }
  0x17   : > { %s1640_s19 = scalar_lea.vmem %s1892_s0, %s1150_s11  ;;  %s1799_s20 = scalar_lea.vmem (%p1598_p4), %s1899_s7, %s1203_s16  }
  0x18   : > { %v301_v14 = vld [vmem:[%s1640_s19] sm:$0xff]  ;;  %v302_v15 = vld [vmem:[%s1640_s19 + $0x8] sm:$0xff]  ;;  %v303_v17 = vld [vmem:[%s1640_s19 + $0x10] sm:$0xff] }
  0x19   : > { %1258 = vmatprep.mubr.msk.f32.mxu0 %vm328_vm0, %v301_v14  ;;  %v304_v18 = vld [vmem:[%s1640_s19 + $0x18] sm:$0xff]  ;;  %v305_v19 = vld [vmem:[%s1640_s19 + $0x20] sm:$0xff]  ;;  %1352 = vmatpush3.bf16.msra.mxu1 %v1338_v16  ;;  %v306_v20 = vld [vmem:[%s1640_s19 + $0x28] sm:$0xff] }
  0x1a   : > { %1259 = vmatmul.mubr.msk.f32.vlgmr.msra.gmra.mrb[0].mxu0 %vm328_vm0, %v302_v15  ;;  %v307_v21 = vld [vmem:[%s1640_s19 + $0x30] sm:$0xff]  ;;  %v308_v22 = vld [vmem:[%s1640_s19 + $0x38] sm:$0xff]  ;;  %v309_v23 = vld [vmem:[%s1640_s19 + $0x40] sm:$0xff]  ;;  %1349 = vmatprep.subr.bf16.mxu1 %v1342_v33 }
  0x1b   : > { %1261 = vmatprep.mubr.msk.f32.mxu0 %vm328_vm0, %v303_v17  ;;  %1333 = vmatpush3.bf16.msra.mxu0 %v1330_v8  ;;  %v310_v24 = vld [vmem:[%s1640_s19 + $0x48] sm:$0xff]  ;;  %v311_v25 = vld [vmem:[%s1640_s19 + $0x50] sm:$0xff]  ;;  %v312_v26 = vld [vmem:[%s1640_s19 + $0x58] sm:$0xff] }
  0x1c   : > { %1335 = vmatprep.subr.bf16.mxu0 %v1334_v11  ;;  %v313_v27 = vld [vmem:[%s1640_s19 + $0x60] sm:$0xff]  ;;  %v314_v28 = vld [vmem:[%s1640_s19 + $0x68] sm:$0xff]  ;;  %v315_v29 = vld [vmem:[%s1640_s19 + $0x70] sm:$0xff] }
  0x1d   : > { %v316_v30 = vld [vmem:[%s1640_s19 + $0x78] sm:$0xff]  ;;  %1353 = vmatpush3.bf16.msra.mxu1 %v1342_v33 }
  0x1e   : > { %1262 = vmatmul.mubr.msk.f32.gmra.mrb[2].mxu0 %vm328_vm0, %v304_v18 }
  0x1f   : > { %1264 = vmatprep.mubr.msk.f32.mxu0 %vm328_vm0, %v305_v19  ;;  %1337 = vmatpush3.bf16.msra.mxu0 %v1334_v11  ;;  %v1702_v19 = vld [vmem:[%s1896_s4] ss:$0 sm:$0xff] }
  0x20   : > { %1339 = vmatprep.subr.bf16.mxu0 %v1338_v16 }
  0x22   : > { %1265 = vmatmul.mubr.msk.f32.gmra.mrb[4].mxu0 %vm328_vm0, %v306_v20 }
  0x23   : > { %1267 = vmatprep.mubr.msk.f32.mxu0 %vm328_vm0, %v307_v21  ;;  %1341 = vmatpush3.bf16.msra.mxu0 %v1338_v16 }
  0x24   : > { %1343 = vmatprep.subr.bf16.mxu0 %v1342_v33 }
  0x26   : > { %1268 = vmatmul.mubr.msk.f32.gmra.mrb[6].mxu0 %vm328_vm0, %v308_v22 }
  0x27   : > { %1270 = vmatprep.mubr.msk.f32.mxu0 %vm328_vm0, %v309_v23  ;;  %1345 = vmatpush3.bf16.msra.mxu0 %v1342_v33 }
  0x2a   : > { %1271 = vmatmul.mubr.msk.f32.gmra.mrb[8].mxu0 %vm328_vm0, %v310_v24  ;;  %v1709_v24 = vld [vmem:[%s1897_s5] ss:$0 sm:$0xff] }
  0x2b   : > { %1273 = vmatprep.mubr.msk.f32.mxu0 %vm328_vm0, %v311_v25 }
  0x2e   : > { %1274 = vmatmul.mubr.msk.f32.gmra.mrb[10].mxu0 %vm328_vm0, %v312_v26 }
  0x2f   : > { %1276 = vmatprep.mubr.msk.f32.mxu0 %vm328_vm0, %v313_v27 }
  0x32   : > { %1277 = vmatmul.mubr.msk.f32.gmra.mrb[12].mxu0 %vm328_vm0, %v314_v28 }
  0x33   : > { %1279 = vmatprep.mubr.msk.f32.mxu0 %vm328_vm0, %v315_v29 }
  0x36   : > { %1280 = vmatmul.mubr.msk.f32.gmra.mrb[14].mxu0 %vm328_vm0, %v316_v30 }
  0xed   : > { %v1260_v35 = vpop.f32.mrb[0].mxu0 }
  0xee   : > { %v449_v36 = vadd.f32 %v1260_v35, %v1151_v34  ;;  %v443_v37 = vpop.f32.mrb[1].mxu0 }
  0xef   : > { %v444_v38 = vadd.f32 %v1151_v34, %v443_v37 }
  0xf0   : > { %v523_v41 = vmax.f32 %v449_v36, 0.0 }
  0xf1   : > { %v522_v39 = vmax.f32 %v444_v38, 0.0  ;;  %v1263_v40 = vpop.f32.mrb[2].mxu0 }
  0xf2   : > { %v459_v42 = vadd.f32 %v1263_v40, %v1151_v34  ;;  %v453_v43 = vpop.f32.mrb[3].mxu0 }
  0xf3   : > { %v454_v44 = vadd.f32 %v1151_v34, %v453_v43  ;;  %1298 = vmatprep.mubr.msk.f32.mxu0 %vm553_vm1, %v522_v39 }
  0xf4   : > { %1299 = vmatmul.mubr.msk.f32.vlgmr.msra.gmra.mrb[16].mxu0 %vm553_vm1, %v523_v41  ;;  %v525_v47 = vmax.f32 %v459_v42, 0.0 }
  0xf5   : > { %v524_v45 = vmax.f32 %v454_v44, 0.0  ;;  %v1266_v46 = vpop.f32.mrb[4].mxu0 }
  0xf6   : > { %v469_v48 = vadd.f32 %v1266_v46, %v1151_v34  ;;  %v463_v49 = vpop.f32.mrb[5].mxu0 }
  0xf7   : > { %v464_v50 = vadd.f32 %v1151_v34, %v463_v49  ;;  %1301 = vmatprep.mubr.msk.f32.mxu1 %vm553_vm1, %v524_v45 }
  0xf8   : > { %v527_v51 = vmax.f32 %v469_v48, 0.0  ;;  %1302 = vmatmul.mubr.msk.f32.vlgmr.msra.gmra.mrb[0].mxu1 %vm553_vm1, %v525_v47 }
  0xf9   : > { %v526_v52 = vmax.f32 %v464_v50, 0.0  ;;  %v1269_v53 = vpop.f32.mrb[6].mxu0 }
  0xfa   : > { %v479_v54 = vadd.f32 %v1269_v53, %v1151_v34  ;;  %v473_v55 = vpop.f32.mrb[7].mxu0 }
  0xfb   : > { %v474_v56 = vadd.f32 %v1151_v34, %v473_v55  ;;  %1304 = vmatprep.mubr.msk.f32.mxu1 %vm553_vm1, %v526_v52 }
  0xfc   : > { %v529_v57 = vmax.f32 %v479_v54, 0.0  ;;  %1305 = vmatmul.mubr.msk.f32.gmra.mrb[2].mxu1 %vm553_vm1, %v527_v51 }
  0xfd   : > { %v528_v58 = vmax.f32 %v474_v56, 0.0  ;;  %v1272_v59 = vpop.f32.mrb[8].mxu0 }
  0xfe   : > { %v489_v60 = vadd.f32 %v1272_v59, %v1151_v34  ;;  %v483_v61 = vpop.f32.mrb[9].mxu0 }
  0xff   : > { %v484_v62 = vadd.f32 %v1151_v34, %v483_v61  ;;  %1307 = vmatprep.mubr.msk.f32.mxu1 %vm553_vm1, %v528_v58 }
 0x100   : > { %v531_v63 = vmax.f32 %v489_v60, 0.0  ;;  %1308 = vmatmul.mubr.msk.f32.gmra.mrb[4].mxu1 %vm553_vm1, %v529_v57 }
 0x101   : > { %v530_v0 = vmax.f32 %v484_v62, 0.0  ;;  %v1275_v1 = vpop.f32.mrb[10].mxu0 }
 0x102   : > { %v499_v2 = vadd.f32 %v1275_v1, %v1151_v34  ;;  %v493_v3 = vpop.f32.mrb[11].mxu0 }
 0x103   : > { %v494_v4 = vadd.f32 %v1151_v34, %v493_v3  ;;  %1310 = vmatprep.mubr.msk.f32.mxu1 %vm553_vm1, %v530_v0 }
 0x104   : > { %v533_v5 = vmax.f32 %v499_v2, 0.0  ;;  %1311 = vmatmul.mubr.msk.f32.gmra.mrb[6].mxu1 %vm553_vm1, %v531_v63 }
 0x105   : > { %v532_v6 = vmax.f32 %v494_v4, 0.0  ;;  %v1278_v7 = vpop.f32.mrb[12].mxu0 }
 0x106   : > { %v509_v8 = vadd.f32 %v1278_v7, %v1151_v34  ;;  %v503_v9 = vpop.f32.mrb[13].mxu0 }
 0x107   : > { %v504_v10 = vadd.f32 %v1151_v34, %v503_v9  ;;  %1313 = vmatprep.mubr.msk.f32.mxu1 %vm553_vm1, %v532_v6 }
 0x108   : > { %v535_v11 = vmax.f32 %v509_v8, 0.0  ;;  %1314 = vmatmul.mubr.msk.f32.gmra.mrb[8].mxu1 %vm553_vm1, %v533_v5 }
 0x109   : > { %v534_v12 = vmax.f32 %v504_v10, 0.0  ;;  %v1281_v13 = vpop.f32.mrb[14].mxu0 }
 0x10a   : > { %v519_v14 = vadd.f32 %v1281_v13, %v1151_v34  ;;  %v513_v15 = vpop.f32.mrb[15].mxu0 }
 0x10b   : > { %v514_v16 = vadd.f32 %v1151_v34, %v513_v15  ;;  %1316 = vmatprep.mubr.msk.f32.mxu1 %vm553_vm1, %v534_v12 }
 0x10c   : > { %v537_v17 = vmax.f32 %v519_v14, 0.0  ;;  %1317 = vmatmul.mubr.msk.f32.gmra.mrb[10].mxu1 %vm553_vm1, %v535_v11 }
 0x10d   : > { %v536_v18 = vmax.f32 %v514_v16, 0.0 }
 0x10f   : > { %1319 = vmatprep.mubr.msk.f32.mxu1 %vm553_vm1, %v536_v18 }
 0x110   : > { %1320 = vmatmul.mubr.msk.f32.gmra.mrb[12].mxu1 %vm553_vm1, %v537_v17 }
 0x1c7   : > { %v1300_v20 = vpop.f32.mrb[16].mxu0 }
 0x1c8   : > { %v674_v21 = vadd.f32 %v1300_v20, %v1702_v19  ;;  %v668_v22 = vpop.f32.mrb[17].mxu0 }
 0x1c9   : > { %v669_v23 = vadd.f32 %v1702_v19, %v668_v22 }
 0x1ca   : > { %v748_v25 = vmax.f32 %v674_v21, 0.0 }
 0x1cb   : > { %v747_v26 = vmax.f32 %v669_v23, 0.0  ;;  %v1303_v27 = vpop.f32.mrb[0].mxu1 }
 0x1cc   : > { %v684_v28 = vadd.f32 %v1303_v27, %v1702_v19  ;;  %v678_v29 = vpop.f32.mrb[1].mxu1  ;;  %v771_v30 = vmul.f32 %v1709_v24, %v748_v25 }
 0x1cd   : > { %v679_v31 = vadd.f32 %v1702_v19, %v678_v29  ;;  %v770_v34 = vmul.f32 %v1709_v24, %v747_v26 }
 0x1ce   : > { %v750_v32 = vmax.f32 %v684_v28, 0.0  ;;  %v789_v33 = vsel %vm328_vm0, %v771_v30, 0.0 }
 0x1cf   : > { %v749_v35 = vmax.f32 %v679_v31, 0.0  ;;  %v1306_v36 = vpop.f32.mrb[2].mxu1  ;;  %790 = vadd.xlane.f32.xlu0 %v789_v33  ;;  %v786_v43 = vsel %vm328_vm0, %v770_v34, 0.0 }
 0x1d0   : > { %v694_v37 = vadd.f32 %v1306_v36, %v1702_v19  ;;  %v688_v38 = vpop.f32.mrb[3].mxu1  ;;  %v773_v39 = vmul.f32 %v1709_v24, %v750_v32 }
 0x1d1   : > { %v689_v40 = vadd.f32 %v1702_v19, %v688_v38  ;;  %v772_v44 = vmul.f32 %v1709_v24, %v749_v35  ;;  %v835_v38 = vstv %s834_s12 }
 0x1d2   : > { %v752_v41 = vmax.f32 %v694_v37, 0.0  ;;  %v795_v42 = vsel %vm328_vm0, %v773_v39, 0.0 }
 0x1d3   : > { %v751_v45 = vmax.f32 %v689_v40, 0.0  ;;  %796 = vadd.xlane.f32.xlu1 %v795_v42  ;;  %v1309_v46 = vpop.f32.mrb[4].mxu1  ;;  %787 = vadd.xlane.f32.xlu0 %v786_v43  ;;  %v792_v52 = vsel %vm328_vm0, %v772_v44, 0.0 }
 0x1d4   : > { %v704_v47 = vadd.f32 %v1309_v46, %v1702_v19  ;;  %v698_v48 = vpop.f32.mrb[5].mxu1  ;;  %v775_v53 = vmul.f32 %v1709_v24, %v752_v41 }
 0x1d5   : > { %v699_v49 = vadd.f32 %v1702_v19, %v698_v48  ;;  %v774_v50 = vmul.f32 %v1709_v24, %v751_v45 }
 0x1d6   : > { %v754_v51 = vmax.f32 %v704_v47, 0.0  ;;  %v801_v62 = vsel %vm328_vm0, %v775_v53, 0.0 }
 0x1d7   : > { %v753_v54 = vmax.f32 %v699_v49, 0.0  ;;  %v1312_v55 = vpop.f32.mrb[6].mxu1  ;;  %793 = vadd.xlane.f32.xlu1 %v792_v52  ;;  %v798_v56 = vsel %vm328_vm0, %v774_v50, 0.0 }
 0x1d8   : > { %v714_v57 = vadd.f32 %v1312_v55, %v1702_v19  ;;  %v708_v58 = vpop.f32.mrb[7].mxu1  ;;  %799 = vadd.xlane.f32.xlu0 %v798_v56  ;;  %v777_v63 = vmul.f32 %v1709_v24, %v754_v51 }
 0x1d9   : > { %v709_v59 = vadd.f32 %v1702_v19, %v708_v58  ;;  %v776_v60 = vmul.f32 %v1709_v24, %v753_v54 }
 0x1da   : > { %v756_v61 = vmax.f32 %v714_v57, 0.0  ;;  %v807_v8 = vsel %vm328_vm0, %v777_v63, 0.0 }
 0x1db   : > { %v755_v0 = vmax.f32 %v709_v59, 0.0  ;;  %v1315_v1 = vpop.f32.mrb[8].mxu1  ;;  %802 = vadd.xlane.f32.xlu1 %v801_v62  ;;  %v804_v2 = vsel %vm328_vm0, %v776_v60, 0.0 }
 0x1dc   : > { %v724_v3 = vadd.f32 %v1315_v1, %v1702_v19  ;;  %v718_v4 = vpop.f32.mrb[9].mxu1  ;;  %805 = vadd.xlane.f32.xlu0 %v804_v2  ;;  %v779_v9 = vmul.f32 %v1709_v24, %v756_v61 }
 0x1dd   : > { %v719_v5 = vadd.f32 %v1702_v19, %v718_v4  ;;  %v778_v6 = vmul.f32 %v1709_v24, %v755_v0 }
 0x1de   : > { %v758_v7 = vmax.f32 %v724_v3, 0.0  ;;  %v813_v18 = vsel %vm328_vm0, %v779_v9, 0.0 }
 0x1df   : > { %v757_v10 = vmax.f32 %v719_v5, 0.0  ;;  %v1318_v11 = vpop.f32.mrb[10].mxu1  ;;  %808 = vadd.xlane.f32.xlu1 %v807_v8  ;;  %v810_v12 = vsel %vm328_vm0, %v778_v6, 0.0 }
 0x1e0   : > { %v734_v13 = vadd.f32 %v1318_v11, %v1702_v19  ;;  %v728_v14 = vpop.f32.mrb[11].mxu1  ;;  %811 = vadd.xlane.f32.xlu0 %v810_v12  ;;  %v781_v20 = vmul.f32 %v1709_v24, %v758_v7 }
 0x1e1   : > { %v729_v15 = vadd.f32 %v1702_v19, %v728_v14  ;;  %v780_v16 = vmul.f32 %v1709_v24, %v757_v10 }
 0x1e2   : > { %v760_v17 = vmax.f32 %v734_v13, 0.0  ;;  %v819_v30 = vsel %vm328_vm0, %v781_v20, 0.0 }
 0x1e3   : > { %v759_v21 = vmax.f32 %v729_v15, 0.0  ;;  %v1321_v22 = vpop.f32.mrb[12].mxu1  ;;  %814 = vadd.xlane.f32.xlu1 %v813_v18  ;;  %v816_v23 = vsel %vm328_vm0, %v780_v16, 0.0 }
 0x1e4   : > { %v744_v25 = vadd.f32 %v1321_v22, %v1702_v19  ;;  %v738_v26 = vpop.f32.mrb[13].mxu1  ;;  %817 = vadd.xlane.f32.xlu0 %v816_v23  ;;  %v783_v31 = vmul.f32 %v1709_v24, %v760_v17 }
 0x1e5   : > { %v739_v27 = vadd.f32 %v1702_v19, %v738_v26  ;;  %v782_v28 = vmul.f32 %v1709_v24, %v759_v21 }
 0x1e6   : > { %v762_v29 = vmax.f32 %v744_v25, 0.0  ;;  %v825_v35 = vsel %vm328_vm0, %v783_v31, 0.0 }
 0x1e7   : > { %v761_v32 = vmax.f32 %v739_v27, 0.0  ;;  %820 = vadd.xlane.f32.xlu1 %v819_v30  ;;  %v822_v33 = vsel %vm328_vm0, %v782_v28, 0.0 }
 0x1e8   : > { %823 = vadd.xlane.f32.xlu0 %v822_v33  ;;  %v785_v36 = vmul.f32 %v1709_v24, %v762_v29 }
 0x1e9   : > { %v784_v34 = vmul.f32 %v1709_v24, %v761_v32 }
 0x1ea   : > { %v831_v37 = vsel %vm328_vm0, %v785_v36, 0.0 }
 0x1eb   : > { %826 = vadd.xlane.f32.xlu1 %v825_v35  ;;  %v828_v19 = vsel %vm328_vm0, %v784_v34, 0.0 }
 0x1ec   : > { %829 = vadd.xlane.f32.xlu0 %v828_v19 }
 0x1ef   : > { %832 = vadd.xlane.f32.xlu1 %v831_v37 }
 0x25c   : > { %v791_v39 = vpop.xlane.xlu0 %790 }
 0x25d   : > { %v837_v40 = vadd.f32 %v835_v38, %v791_v39 }
 0x25f   : > { %854 = vst.msk [vmem:[%s1758_s15 + $0x8] sm:$0xff] %vm852_vm2, %v837_v40 }
 0x260   : > { %v797_v24 = vpop.xlane.xlu1 %796  ;;  %v788_v41 = vpop.xlane.xlu0 %787 }
 0x261   : > { %v839_v42 = vadd.f32 %v835_v38, %v797_v24  ;;  %v836_v43 = vadd.f32 %v835_v38, %v788_v41 }
 0x263   : > { %856 = vst.msk [vmem:[%s1758_s15 + $0x18] sm:$0xff] %vm852_vm2, %v839_v42  ;;  %853 = vst.msk [vmem:[%s1758_s15] sm:$0xff] %vm852_vm2, %v836_v43 }
 0x264   : > { %v794_v44 = vpop.xlane.xlu1 %793 }
 0x265   : > { %v838_v45 = vadd.f32 %v835_v38, %v794_v44  ;;  %v800_v46 = vpop.xlane.xlu0 %799 }
 0x266   : > { %v840_v47 = vadd.f32 %v835_v38, %v800_v46 }
 0x267   : > { %855 = vst.msk [vmem:[%s1758_s15 + $0x10] sm:$0xff] %vm852_vm2, %v838_v45 }
 0x268   : > { %857 = vst.msk [vmem:[%s1758_s15 + $0x20] sm:$0xff] %vm852_vm2, %v840_v47  ;;  %v803_v48 = vpop.xlane.xlu1 %802 }
 0x269   : > { %v841_v49 = vadd.f32 %v835_v38, %v803_v48  ;;  %v806_v50 = vpop.xlane.xlu0 %805 }
 0x26a   : > { %v842_v51 = vadd.f32 %v835_v38, %v806_v50 }
 0x26b   : > { %858 = vst.msk [vmem:[%s1758_s15 + $0x28] sm:$0xff] %vm852_vm2, %v841_v49 }
 0x26c   : > { %859 = vst.msk [vmem:[%s1758_s15 + $0x30] sm:$0xff] %vm852_vm2, %v842_v51  ;;  %v809_v52 = vpop.xlane.xlu1 %808 }
 0x26d   : > { %v843_v53 = vadd.f32 %v835_v38, %v809_v52  ;;  %v812_v54 = vpop.xlane.xlu0 %811 }
 0x26e   : > { %v844_v55 = vadd.f32 %v835_v38, %v812_v54 }
 0x26f   : > { %860 = vst.msk [vmem:[%s1758_s15 + $0x38] sm:$0xff] %vm852_vm2, %v843_v53 }
 0x270   : > { %861 = vst.msk [vmem:[%s1758_s15 + $0x40] sm:$0xff] %vm852_vm2, %v844_v55  ;;  %v815_v56 = vpop.xlane.xlu1 %814 }
 0x271   : > { %v845_v57 = vadd.f32 %v835_v38, %v815_v56  ;;  %v818_v58 = vpop.xlane.xlu0 %817 }
 0x272   : > { %v846_v59 = vadd.f32 %v835_v38, %v818_v58 }
 0x273   : > { %862 = vst.msk [vmem:[%s1758_s15 + $0x48] sm:$0xff] %vm852_vm2, %v845_v57 }
 0x274   : > { %863 = vst.msk [vmem:[%s1758_s15 + $0x50] sm:$0xff] %vm852_vm2, %v846_v59  ;;  %v821_v60 = vpop.xlane.xlu1 %820 }
 0x275   : > { %v847_v61 = vadd.f32 %v835_v38, %v821_v60  ;;  %v824_v62 = vpop.xlane.xlu0 %823 }
 0x276   : > { %v848_v63 = vadd.f32 %v835_v38, %v824_v62 }
 0x277   : > { %864 = vst.msk [vmem:[%s1758_s15 + $0x58] sm:$0xff] %vm852_vm2, %v847_v61 }
 0x278   : > { %865 = vst.msk [vmem:[%s1758_s15 + $0x60] sm:$0xff] %vm852_vm2, %v848_v63  ;;  %v827_v0 = vpop.xlane.xlu1 %826 }
 0x279   : > { %v849_v1 = vadd.f32 %v835_v38, %v827_v0  ;;  %v830_v2 = vpop.xlane.xlu0 %829  ;;  %875 = sbr.rel (!%p1598_p4) target bundleno = 689 (0x2b1), region = 52 }
 0x27a   : > { %v850_v3 = vadd.f32 %v835_v38, %v830_v2 }
 0x27b   : > { %866 = vst.msk [vmem:[%s1758_s15 + $0x68] sm:$0xff] %vm852_vm2, %v849_v1 }
 0x27c   : > { %867 = vst.msk [vmem:[%s1758_s15 + $0x70] sm:$0xff] %vm852_vm2, %v850_v3  ;;  %v833_v4 = vpop.xlane.xlu1 %832 }
 0x27d   : > { %v851_v5 = vadd.f32 %v835_v38, %v833_v4 }
 0x27f   : > { %868 = vst.msk [vmem:[%s1758_s15 + $0x78] sm:$0xff] %vm852_vm2, %v851_v5 }
 0x280   : > { %s1908_s26 = smov (!%p878_p8, %s877_s26), 16 }
 0x281   : > { %s1188_s21 = sshll.u32 %s1908_s26, 7 }
 0x282   : > { %p1191_p9 = scmp.eq.s32.totalorder %s1188_s21, 0 }
 0x283   : > { %s1805_s22 = sshrl.u32 (!%p1191_p9), %s1908_s26, 4 }
 0x284   : > { %886 = sbr.rel (%p1191_p9) target bundleno = 689 (0x2b1), region = 56  ;;  %p1192_p10 = scmp.le.s32.totalorder (!%p1191_p9), %s1805_s22, 0 }
 0x28b   : > { %1100 = sbr.rel (%p1192_p10) target bundleno = 668 (0x29c), region = 132  ;;  %s1901_s6 = smov (!%p1192_p10), %s1799_s20 }
 0x28c   : > { %s1902_s10 = smov (!%p1192_p10), %s1758_s15  ;;  %s1814_s17 = smov (!%p1192_p10), 0  }
 0x28d   : > { %s1816_s23 = smov (!%p1192_p10), 0  }
 0x292 LB: >> { %v978_v6 = vld [vmem:[%s1504_s10] sm:$0xff]  ;;  %v980_v7 = vld [vmem:[%s1504_s10 + $0x8] sm:$0xff]  ;;  %v982_v8 = vld [vmem:[%s1504_s10 + $0x10] sm:$0xff]  ;;  %s1010_s24 = sadd.s32 1, %s1508_s17  ;;  %s972_s23 = sadd.s32 1, %s1512_s23   ;;  %s1512_s23 = sphi %s1816_s23, %s972_s23   ;;  %s1508_s17 = sphi %s1814_s17, %s1903_s17   ;;  %s1504_s10 = sphi %s1902_s10, %s1015_s10   ;;  %s1500_s6 = sphi %s1901_s6, %s1016_s6  }
 0x293   : >> { %979 = vst [vmem:[%s1500_s6] sm:$0xff] %v978_v6  ;;  %981 = vst [vmem:[%s1500_s6 + $0x8] sm:$0xff] %v980_v7  ;;  %v984_v9 = vld [vmem:[%s1504_s10 + $0x18] sm:$0xff]  ;;  %v986_v10 = vld [vmem:[%s1504_s10 + $0x20] sm:$0xff]  ;;  %p1011_p11 = scmp.ge.s32.totalorder %s1010_s24, %s1805_s22  ;;  %p971_p12 = scmp.ge.s32.totalorder %s972_s23, %s1805_s22 }
 0x294   : >> { %983 = vst [vmem:[%s1500_s6 + $0x10] sm:$0xff] %v982_v8  ;;  %v988_v11 = vld [vmem:[%s1504_s10 + $0x28] sm:$0xff]  ;;  %985 = vst [vmem:[%s1500_s6 + $0x18] sm:$0xff] %v984_v9  ;;  %v990_v12 = vld [vmem:[%s1504_s10 + $0x30] sm:$0xff] }
 0x295   : >> { %987 = vst [vmem:[%s1500_s6 + $0x20] sm:$0xff] %v986_v10  ;;  %989 = vst [vmem:[%s1500_s6 + $0x28] sm:$0xff] %v988_v11  ;;  %v992_v13 = vld [vmem:[%s1504_s10 + $0x38] sm:$0xff]  ;;  %v994_v14 = vld [vmem:[%s1504_s10 + $0x40] sm:$0xff]  ;;  %s1910_s24 = smov (%p1011_p11, %s1010_s24), 0  ;;  %974 = sbr.rel (!%p971_p12) target bundleno = 658 (0x292), region = 138 }
 0x296   : >> { %991 = vst [vmem:[%s1500_s6 + $0x30] sm:$0xff] %v990_v12  ;;  %993 = vst [vmem:[%s1500_s6 + $0x38] sm:$0xff] %v992_v13  ;;  %v996_v15 = vld [vmem:[%s1504_s10 + $0x48] sm:$0xff]  ;;  %v998_v16 = vld [vmem:[%s1504_s10 + $0x50] sm:$0xff]  ;;  %s1193_s25 = sshll.u32 %s1910_s24, 7  ;;  %s1903_s17 = smov %s1910_s24 }
 0x297   : >> { %995 = vst [vmem:[%s1500_s6 + $0x40] sm:$0xff] %v994_v14  ;;  %v1000_v17 = vld [vmem:[%s1504_s10 + $0x58] sm:$0xff]  ;;  %997 = vst [vmem:[%s1500_s6 + $0x48] sm:$0xff] %v996_v15  ;;  %v1002_v18 = vld [vmem:[%s1504_s10 + $0x60] sm:$0xff] }
 0x298   : >> { %999 = vst [vmem:[%s1500_s6 + $0x50] sm:$0xff] %v998_v16  ;;  %1001 = vst [vmem:[%s1500_s6 + $0x58] sm:$0xff] %v1000_v17  ;;  %v1004_v20 = vld [vmem:[%s1504_s10 + $0x68] sm:$0xff]  ;;  %v1006_v21 = vld [vmem:[%s1504_s10 + $0x70] sm:$0xff] }
 0x299   : >> { %1003 = vst [vmem:[%s1500_s6 + $0x60] sm:$0xff] %v1002_v18  ;;  %1005 = vst [vmem:[%s1500_s6 + $0x68] sm:$0xff] %v1004_v20  ;;  %v1008_v22 = vld [vmem:[%s1504_s10 + $0x78] sm:$0xff]  ;;  %s1015_s10 = scalar_lea.vmem %s1758_s15, %s1193_s25 [#allocation3]  }
 0x29a   : >> { %1007 = vst [vmem:[%s1500_s6 + $0x70] sm:$0xff] %v1006_v21  ;;  %1009 = vst [vmem:[%s1500_s6 + $0x78] sm:$0xff] %v1008_v22  ;;  %s1016_s6 = scalar_lea.vmem %s1799_s20, %s1193_s25  }
 0x29c PF: > { %s1874_s28 = sand.u32 15, %s1908_s26   ;;  %s1204_s30 = sshll.u32 %s1805_s22, 7 }
 0x29d   : > { %s1021_s8 = scalar_lea.vmem %s1758_s15, %s1204_s30 [#allocation3]   ;;  %s1023_s11 = scalar_lea.vmem %s1799_s20, %s1204_s30  }
 0x29e   : > { %p1198_p13 = scmp.le.s32.totalorder %s1874_s28, 0 }
 0x29f   : > { %s1514_s12 = smov (!%p1198_p13), %s1023_s11   ;;  %s1518_s13 = smov (!%p1198_p13), %s1021_s8  }
 0x2a0   : > { %1114 = sbr.rel (%p1198_p13) target bundleno = 689 (0x2b1), region = 143  ;;  %s1522_s14 = smov (!%p1198_p13), 0  }
 0x2a1   : > { %s1526_s16 = smov (!%p1198_p13), 0  }
 0x2a7 LB: >> { %v1033_v23 = vld [vmem:[%s1520_s13] sm:$0xff]  ;;  %s1035_s26 = sadd.s32 1, %s1524_s14  ;;  %s1027_s16 = sadd.s32 1, %s1528_s16   ;;  %s1528_s16 = sphi %s1526_s16, %s1027_s16   ;;  %s1524_s14 = sphi %s1522_s14, %s1523_s14   ;;  %s1520_s13 = sphi %s1518_s13, %s1040_s13   ;;  %s1516_s12 = sphi %s1514_s12, %s1041_s12  }
 0x2a8   : >> { %1034 = vst [vmem:[%s1516_s12] sm:$0xff] %v1033_v23  ;;  %p1036_p0 = scmp.ge.s32.totalorder %s1035_s26, %s1874_s28  ;;  %p1026_p1 = scmp.ge.s32.totalorder %s1027_s16, %s1874_s28 }
 0x2aa   : >> { %s1912_s26 = smov (%p1036_p0, %s1035_s26), 0  ;;  %1029 = sbr.rel (!%p1026_p1) target bundleno = 679 (0x2a7), region = 149 }
 0x2ab   : >> { %s1199_s15 = sshll.u32 %s1912_s26, 3  ;;  %s1523_s14 = smov %s1912_s26  }
 0x2ac   : >> { %s1040_s13 = scalar_lea.vmem %s1021_s8, %s1199_s15 [#allocation3]   ;;  %s1041_s12 = scalar_lea.vmem %s1023_s11, %s1199_s15  }
 0x2b1 PF: > { %p15_p2 = scmp.ge.s32.totalorder %s1588_s29, 4   ;;  %s1904_s26 = smov %s1492_s27 }
 0x2b2   : > { %s1905_s27 = smov %s1596_s9  ;;  %s1906_s28 = smov %s1588_s29 }
 0x2b3   :  { %17 = sbr.rel (!%p15_p2) target bundleno = 4 (0x4), region = 160 }

</bundles_post_ra>
